<compile_context>
chip_gen: v6e
topology: v6e:2x2x1
jax: 0.10.0
libtpu: 0.0.40
codegen_flags: <defaults>
</compile_context>

<pallas_src>
from typing import NamedTuple

import jax
import jax.numpy as jnp
from jax.experimental import pallas as pl
from jax.experimental.pallas import tpu as pltpu


_LANE = 128          # lane width (last-dim alignment)
_SUBLANE = 8         # sublane count (second-to-last alignment)
_SINGLE_K_MAX = 4096  # padded K up to this is handled as one un-split dot
_TK_SPLIT_CAP = 2048  # K-tile cap when K must be split
_TM_CAP = 512
_TN_CAP = 512


def _round_up(x, m):
    return ((x + m - 1) // m) * m


def _pick_tm(batch):
    """Batch tile: whole padded batch when small (weight streams once)."""
    bp8 = _round_up(max(batch, 1), _SUBLANE)
    if bp8 <= _TM_CAP:
        return bp8, bp8
    tm = 256
    return tm, _round_up(batch, tm)


def _pick_tn(np_):
    """Output-feature tile: 128-multiple dividing Np; prefer >=2 blocks (v7x 2-TC)."""
    if np_ <= _LANE:
        return np_
    cand = [t for t in range(_LANE, min(_TN_CAP, np_ // 2) + 1, _LANE)
            if np_ % t == 0]
    return max(cand) if cand else _LANE


def _pick_tk(kp):
    """K tile (split path): largest 128-multiple <= cap dividing Kp."""
    cand = [t for t in range(_LANE, min(_TK_SPLIT_CAP, kp) + 1, _LANE)
            if kp % t == 0]
    return max(cand) if cand else _LANE


def _vmem_limit_bytes(tm, tn, tk, out_itemsize, use_acc):
    """Derive the VMEM cap from the actual tile footprint (double-buffered),
    with headroom, capped at 40 MiB so it is safe on v7x (64 MiB physical)."""
    x_b = tm * tk * 2                 # bf16 activation tile
    w_b = tk * tn * 2                 # bf16 weight tile
    b_b = _SUBLANE * tn * 4           # bias tile (padded sublane)
    o_b = tm * tn * out_itemsize
    acc_b = tm * tn * 4 if use_acc else 0
    total = 2 * (x_b + w_b + b_b + o_b) + acc_b
    total = int(total * 1.3) + (2 << 20)
    return max(16 << 20, min(total, 40 << 20))


# --------------------------------------------------------------------------
# Kernels
# --------------------------------------------------------------------------

def _linear_kernel_fused(x_ref, w_ref, b_ref, o_ref):
    # Single-K path: whole contraction in one dot, bias fused, no scratch.
    o_ref[...] = (
        jnp.dot(x_ref[...], w_ref[...], preferred_element_type=jnp.float32)
        + b_ref[...]
    ).astype(o_ref.dtype)


def _linear_kernel_ksplit_f32out(x_ref, w_ref, b_ref, o_ref):
    # K-split path, f32 output: accumulate directly into the resident output
    # block (its index_map ignores k), no scratch, assign at k == 0.
    k = pl.program_id(2)
    partial = jnp.dot(x_ref[...], w_ref[...], preferred_element_type=jnp.float32)

    @pl.when(k == 0)
    def _():
        o_ref[...] = partial

    @pl.when(k != 0)
    def _():
        o_ref[...] += partial

    @pl.when(k == pl.num_programs(2) - 1)
    def _():
        o_ref[...] += b_ref[...]


def _linear_kernel_ksplit_acc(x_ref, w_ref, b_ref, o_ref, acc_ref):
    # K-split path, non-f32 output: keep an f32 VMEM accumulator.
    k = pl.program_id(2)
    partial = jnp.dot(x_ref[...], w_ref[...], preferred_element_type=jnp.float32)

    @pl.when(k == 0)
    def _():
        acc_ref[...] = partial

    @pl.when(k != 0)
    def _():
        acc_ref[...] += partial

    @pl.when(k == pl.num_programs(2) - 1)
    def _():
        o_ref[...] = (acc_ref[...] + b_ref[...]).astype(o_ref.dtype)


# --------------------------------------------------------------------------
# Parameter preparation (do ONCE at model init, reuse across forwards)
# --------------------------------------------------------------------------

class ImageEncoderParams(NamedTuple):
    wT: jax.Array   # (Kp, Np) bf16  -- weight.T, zero-padded to 128-multiples
    b: jax.Array    # (1, Np)  f32   -- bias, zero-padded
    isz: int
    hsz: int


def prepare_image_encoder_params(weight, bias):
    """Transpose / cast / pad the nn.Linear parameters once."""
    hsz, isz = weight.shape
    kp = _round_up(isz, _LANE)
    np_ = _round_up(hsz, _LANE)

    w_t = weight.T.astype(jnp.bfloat16)            # (isz, hsz)
    if (kp, np_) != (isz, hsz):
        w_t = jnp.zeros((kp, np_), jnp.bfloat16).at[:isz, :hsz].set(w_t)

    b = bias.astype(jnp.float32).reshape(1, hsz)
    if np_ != hsz:
        b = jnp.zeros((1, np_), jnp.float32).at[:, :hsz].set(b)

    return ImageEncoderParams(wT=w_t, b=b, isz=isz, hsz=hsz)


# --------------------------------------------------------------------------
# Forward
# --------------------------------------------------------------------------

def image_encoder_apply(x, params: ImageEncoderParams, noop: bool = False):
    """Pallas ImageEncoder.forward using pre-prepared parameters."""
    if noop:
        return x

    batch, isz = x.shape
    assert isz == params.isz, "weight/input feature-size mismatch"
    kp, np_ = params.wT.shape
    out_dtype = x.dtype
    out_itemsize = jnp.dtype(out_dtype).itemsize

    tm, bp = _pick_tm(batch)
    tn = _pick_tn(np_)

    # Cast activations for the MXU; pad only if actually needed.
    x_bf = x.astype(jnp.bfloat16)
    if (bp, kp) != (batch, isz):
        x_bf = jnp.zeros((bp, kp), jnp.bfloat16).at[:batch, :isz].set(x_bf)

    bytes_accessed = (
        bp * kp * 2 + kp * np_ * 2 + np_ * 4 + bp * np_ * out_itemsize
    )
    cost = pl.CostEstimate(flops=2 * bp * kp * np_, transcendentals=0,
                           bytes_accessed=bytes_accessed)

    single_k = kp <= _SINGLE_K_MAX

    if single_k:
        tk = kp
        grid = (bp // tm, np_ // tn)
        grid_spec = pltpu.PrefetchScalarGridSpec(
            num_scalar_prefetch=0,
            grid=grid,
            in_specs=[
                pl.BlockSpec((tm, kp), lambda i, j: (i, 0)),   # x: resident over j
                pl.BlockSpec((kp, tn), lambda i, j: (0, j)),   # weight: streamed once
                pl.BlockSpec((1, tn), lambda i, j: (0, j)),    # bias
            ],
            out_specs=pl.BlockSpec((tm, tn), lambda i, j: (i, j)),
            scratch_shapes=[],
        )
        kernel = _linear_kernel_fused
        semantics = ("parallel", "parallel")
        use_acc = False
    else:
        tk = _pick_tk(kp)
        grid = (bp // tm, np_ // tn, kp // tk)
        f32_out = out_dtype == jnp.float32
        use_acc = not f32_out
        grid_spec = pltpu.PrefetchScalarGridSpec(
            num_scalar_prefetch=0,
            grid=grid,
            in_specs=[
                pl.BlockSpec((tm, tk), lambda i, j, k: (i, k)),
                pl.BlockSpec((tk, tn), lambda i, j, k: (k, j)),
                pl.BlockSpec((1, tn), lambda i, j, k: (0, j)),
            ],
            out_specs=pl.BlockSpec((tm, tn), lambda i, j, k: (i, j)),
            scratch_shapes=(
                [] if f32_out else [pltpu.VMEM((tm, tn), jnp.float32)]
            ),
        )
        kernel = _linear_kernel_ksplit_f32out if f32_out else _linear_kernel_ksplit_acc
        semantics = ("parallel", "parallel", "arbitrary")

    y_p = pl.pallas_call(
        kernel,
        out_shape=jax.ShapeDtypeStruct((bp, np_), out_dtype),
        grid_spec=grid_spec,
        compiler_params=pltpu.CompilerParams(
            dimension_semantics=semantics,
            vmem_limit_bytes=_vmem_limit_bytes(tm, tn, tk, out_itemsize, use_acc),
        ),
        cost_estimate=cost,
    )(x_bf, params.wT, params.b)

    if (bp, np_) != (batch, params.hsz):
        return y_p[:batch, :params.hsz]
    return y_p


def image_encoder_forward(x, weight, bias, noop=False):
    """Convenience wrapper (prepares params per call). For repeated use,
    call prepare_image_encoder_params once and reuse with image_encoder_apply."""
    if noop:
        return x
    return image_encoder_apply(x, prepare_image_encoder_params(weight, bias))


# --------------------------------------------------------------------------
# Self-test
# --------------------------------------------------------------------------

if __name__ == "__main__":
    # Small shapes consistent with the module: a batch of feature vectors.
    B, isz, hsz = 8, 64, 32

    key = jax.random.PRNGKey(0)
    kx, kw, kb = jax.random.split(key, 3)

    x = jax.random.normal(kx, (B, isz), dtype=jnp.float32)
    weight = jax.random.normal(kw, (hsz, isz), dtype=jnp.float32) * 0.02
    bias = jax.random.normal(kb, (hsz,), dtype=jnp.float32) * 0.01

    # Prepare parameters once (hoisted weight transpose/cast/pad).
    params = prepare_image_encoder_params(weight, bias)

    # noop=False path (the Linear).
    y = image_encoder_apply(x, params, noop=False)
    y = jax.block_until_ready(y)
    assert y.shape == (B, hsz)

    # Tight reference: same bf16 operand rounding, f32 accumulation.
    y_ref_bf16 = (
        jnp.dot(x.astype(jnp.bfloat16), weight.astype(jnp.bfloat16).T,
                preferred_element_type=jnp.float32)
        + bias
    )
    assert jnp.allclose(y, y_ref_bf16, atol=1e-3, rtol=1e-3)

    # Loose reference: pure f32 nn.Linear semantics (bf16 rounding slack).
    y_ref_f32 = x @ weight.T + bias
    assert jnp.allclose(y, y_ref_f32, atol=2e-2, rtol=2e-2)

    # noop=True path (identity).
    y_noop = image_encoder_apply(x, params, noop=True)
    y_noop = jax.block_until_ready(y_noop)
    assert jnp.array_equal(y_noop, x)

    print("KERNEL_OK")
</pallas_src>

<mosaic_0001>
module attributes {stable_mosaic.version = 11 : i64} {
  func.func @_linear_kernel_fused(%arg0: i32, %arg1: i32, %arg2: memref<8x128xbf16, #tpu.memory_space<vmem>>, %arg3: memref<128x128xbf16, #tpu.memory_space<vmem>>, %arg4: memref<1x128xf32, #tpu.memory_space<vmem>>, %arg5: memref<8x128xf32, #tpu.memory_space<vmem>>) attributes {dimension_semantics = [#tpu.dimension_semantics<parallel>, #tpu.dimension_semantics<parallel>], iteration_bounds = array<i64: 1, 1>, scalar_prefetch = 0 : i64, scratch_operands = 0 : i64, tpu.core_type = #tpu.core_type<tc>, window_params = [{transform_indices = @transform_0, window_bounds = array<i64: 8, 128>}, {transform_indices = @transform_1, window_bounds = array<i64: 128, 128>}, {transform_indices = @transform_2, window_bounds = array<i64: 1, 128>}, {transform_indices = @transform_3, window_bounds = array<i64: 8, 128>}]} {
    %c0 = arith.constant 0 : index
    %c0_0 = arith.constant 0 : index
    %0 = vector.load %arg2[%c0, %c0_0] : memref<8x128xbf16, #tpu.memory_space<vmem>>, vector<8x128xbf16>
    %c0_1 = arith.constant 0 : index
    %c0_2 = arith.constant 0 : index
    %1 = vector.load %arg3[%c0_1, %c0_2] : memref<128x128xbf16, #tpu.memory_space<vmem>>, vector<128x128xbf16>
    %cst = arith.constant dense<0.000000e+00> : vector<8x128xf32>
    %2 = tpu.matmul %0, %1, %cst {dimension_numbers = #tpu.dot_dimension_numbers<[1], [0], [0], [1], [0, 0, 1, 1], [], []>} : vector<8x128xbf16>, vector<128x128xbf16>, vector<8x128xf32> -> vector<8x128xf32>
    %c0_3 = arith.constant 0 : index
    %c0_4 = arith.constant 0 : index
    %3 = vector.load %arg4[%c0_3, %c0_4] : memref<1x128xf32, #tpu.memory_space<vmem>>, vector<1x128xf32>
    %4 = vector.broadcast %3 : vector<1x128xf32> to vector<8x128xf32>
    %5 = arith.addf %2, %4 : vector<8x128xf32>
    %c0_5 = arith.constant 0 : index
    %c0_6 = arith.constant 0 : index
    %6 = vector.load %arg5[%c0_5, %c0_6] : memref<8x128xf32, #tpu.memory_space<vmem>>, vector<8x128xf32>
    tpu.vector_store %arg5[%c0_5, %c0_6], %5 {strides = array<i32>} : memref<8x128xf32, #tpu.memory_space<vmem>>, vector<8x128xf32>,
    return
  }
  func.func @transform_0(%arg0: i32, %arg1: i32) -> (i32, i32) {
    %c0_i32 = arith.constant 0 : i32
    %c0_i32_0 = arith.constant 0 : i32
    return %arg0, %c0_i32 : i32, i32
  }
  func.func @transform_1(%arg0: i32, %arg1: i32) -> (i32, i32) {
    %c0_i32 = arith.constant 0 : i32
    %c0_i32_0 = arith.constant 0 : i32
    return %c0_i32, %arg1 : i32, i32
  }
  func.func @transform_2(%arg0: i32, %arg1: i32) -> (i32, i32) {
    %c0_i32 = arith.constant 0 : i32
    %c0_i32_0 = arith.constant 0 : i32
    return %c0_i32, %arg1 : i32, i32
  }
  func.func @transform_3(%arg0: i32, %arg1: i32) -> (i32, i32) {
    %c0_i32 = arith.constant 0 : i32
    return %arg0, %arg1 : i32, i32
  }
}

</mosaic_0001>

<bundles_post_ra>
// kernel: tpu_custom_call.1
= control target key start
LH: loop header
LB: loop body
LE: loop exit
PB: predicated region body
PF: predicated region fallthrough
CT: control target
= control target key end

     0   :  { %8 = vsyncpa [#allocation3], 0  ;;  %s329_s0 = inlined_call_operand.hbm [shape: bf16[8,128], index: 0, kind: input, shape index: {}]   ;;  %s330_s1 = inlined_call_operand.hbm [shape: bf16[128,128], index: 1, kind: input, shape index: {}]   ;;  %s331_s2 = inlined_call_operand.vmem [shape: f32[1,128], index: 2, kind: input, shape index: {}]   ;;  %s332_s3 = inlined_call_operand.hbm [shape: f32[8,128], index: 3, kind: output, shape index: {}]  }
   0x1   :  { %9 = vsyncpa [#allocation6], 0 }
   0x2   :  { %10 = vsyncpa [#allocation4], 0  ;;  %s290_s12 = smov [#allocation2]   ;;  %s291_s14 = smov [#allocation5]  }
   0x3   :  { %s17_s13 = sshll.u32 %s290_s12, 4  ;;  %s26_s15 = sshll.u32 %s291_s14, 4  ;;  %s18_s13 = int_to_ptr.vmem [resolvable:$true] %s17_s13  ;;  %s27_s15 = int_to_ptr.vmem [resolvable:$true] %s26_s15 }
   0x4   :  { %s232_s16 = scalar_lea.vmem %s18_s13, 64  ;;  %p237_p1 = scmp.lt.s32.totalorder %s18_s13, %s18_s13 }
   0x5   :  { %p233_p0 = scmp.ne.s32.totalorder %s18_s13, %s232_s16  ;;  %p238_p2 = scmp.lt.s32.totalorder %s232_s16, %s232_s16 }
   0x7   :  { %p239_p3 = por %p238_p2, %p237_p1 }
   0x9   :  { %p240_p4 = pnand %p239_p3, %p233_p0 }
   0xb   :  { %243 = shalt.err (!%p240_p4)
}
   0xc   :  { %20 = dma.hbm_to_vmem [thread:$0]  %s329_s0, 64, %s18_s13, [#allocation3]  }
   0xd   :  { %s252_s19 = scalar_lea.vmem %s27_s15, 1024  ;;  %p257_p6 = scmp.lt.s32.totalorder %s27_s15, %s27_s15 }
   0xe   :  { %p253_p5 = scmp.ne.s32.totalorder %s27_s15, %s252_s19  ;;  %p258_p7 = scmp.lt.s32.totalorder %s252_s19, %s252_s19 }
  0x10   :  { %p259_p8 = por %p258_p7, %p257_p6 }
  0x12   :  { %p260_p9 = pnand %p259_p8, %p253_p5 }
  0x14   :  { %263 = shalt.err (!%p260_p9)
}
  0x15   :  { %s292_s20 = smov 64   ;;  %s293_s21 = smov 4  }
  0x16   :  { %32 = dma.hbm_to_vmem [thread:$0]  %s330_s1, 1024, %s27_s15, [#allocation6], %s292_s20, %s292_s20, %s293_s21  }
  0x17   :  { %284 = dma.done.wait [#allocation3], 64  }
  0x18   :  { %285 = vsyncadd [#allocation3], 4294967232 }
  0x19   :  { %286 = dma.done.wait [#allocation6], 1024  }
  0x1a   :  { %287 = vsyncadd [#allocation6], 4294966272  ;;  %v294_v0 = vmov 0.0   ;;  %vm295_vm0 = vmmov 0   ;;  %v216_v1 = vld [vmem:[#allocation5 + $0x38] sm:$0xff]   ;;  %v217_v2 = vld [vmem:[#allocation5 + $0x30] sm:$0xff]  }
  0x1b   :  { %189 = vmatprep.subr.bf16.mxu0 %v294_v0  ;;  %205 = vmatprep.mubr.msk.bf16.mxu0 %vm295_vm0, %v294_v0  ;;  %v218_v3 = vld [vmem:[#allocation5 + $0x28] sm:$0xff]   ;;  %v219_v4 = vld [vmem:[#allocation5 + $0x20] sm:$0xff]   ;;  %v220_v5 = vld [vmem:[#allocation5 + $0x18] sm:$0xff]   ;;  %s296_s24 = smov [#allocation7]  }
  0x1c   :  { %190 = vmatpush3.bf16.msra.mxu0 %v216_v1  ;;  %v221_v6 = vld [vmem:[#allocation5 + $0x10] sm:$0xff]   ;;  %v222_v7 = vld [vmem:[#allocation5 + $0x8] sm:$0xff]   ;;  %v223_v8 = vld [vmem:[#allocation5] sm:$0xff]   ;;  %s161_s25 = sshll.u32 %s296_s24, 4  ;;  %s162_s25 = int_to_ptr.vmem [resolvable:$true] %s161_s25 }
  0x1d   :  { %191 = vmatprep.subr.bf16.mxu0 %v294_v0  ;;  %v42_v9 = vld [vmem:[#allocation2] sm:$0xf]  ;;  %s264_s26 = scalar_lea.vmem %s162_s25, 128  ;;  %p269_p11 = scmp.lt.s32.totalorder %s162_s25, %s162_s25 }
  0x1e   :  { %v171_v10 = vld [vmem:[%s331_s2] ss:$0 sm:$0xff]  ;;  %p265_p10 = scmp.ne.s32.totalorder %s162_s25, %s264_s26  ;;  %p270_p12 = scmp.lt.s32.totalorder %s264_s26, %s264_s26 }
  0x20   :  { %192 = vmatpush3.bf16.msra.mxu0 %v217_v2  ;;  %p271_p13 = por %p270_p12, %p269_p11 }
  0x21   :  { %193 = vmatprep.subr.bf16.mxu0 %v294_v0 }
  0x22   :  { %p272_p0 = pnand %p271_p13, %p265_p10 }
  0x24   :  { %194 = vmatpush3.bf16.msra.mxu0 %v218_v3 }
  0x25   :  { %195 = vmatprep.subr.bf16.mxu0 %v294_v0 }
  0x28   :  { %196 = vmatpush3.bf16.msra.mxu0 %v219_v4 }
  0x29   :  { %197 = vmatprep.subr.bf16.mxu0 %v294_v0 }
  0x2c   :  { %198 = vmatpush3.bf16.msra.mxu0 %v220_v5 }
  0x2d   :  { %199 = vmatprep.subr.bf16.mxu0 %v294_v0 }
  0x30   :  { %200 = vmatpush3.bf16.msra.mxu0 %v221_v6 }
  0x31   :  { %201 = vmatprep.subr.bf16.mxu0 %v294_v0 }
  0x34   :  { %202 = vmatpush3.bf16.msra.mxu0 %v222_v7 }
  0x35   :  { %203 = vmatprep.subr.bf16.mxu0 %v294_v0 }
  0x38   :  { %204 = vmatpush3.bf16.msra.mxu0 %v223_v8 }
  0x3b   :  { %206 = vmatmul.mubr.bf16.vlgmr.msra.gmra.mxu0 %v42_v9 }
  0xfb   :  { %v148_v11 = vpop.f32.mrf.mxu0 }
  0xfc   :  { %v149_v12 = vadd.f32 %v171_v10, %v148_v11 }
  0xfd   :  { %v207_v13 = vpop.f32.mrf.mxu0 }
  0xfe   :  { %154 = vst [vmem:[#allocation7] sm:$0xff] %v149_v12 }
  0xff   :  { %v151_v14 = vpop.f32.mrf.mxu0 }
 0x100   :  { %275 = shalt.err (!%p272_p0)
}
 0x101   :  { %164 = dma.vmem_to_hbm [thread:$0]  %s162_s25, 128, %s332_s3, [#allocation4]   ;;  %v208_v15 = vpop.f32.mrf.mxu0 }
 0x102   :  { %288 = dma.done.wait [#allocation4], 128  }
 0x103   :  { %289 = vsyncadd [#allocation4], 4294967168 }
 0x104   :  { %168 = vsyncpa [#allocation3], 1 }
 0x105   :  { %169 = vsyncpa [#allocation6], 1 }
 0x106   :  { %170 = vsyncpa [#allocation4], 1 }

</bundles_post_ra>
